<compile_context>
chip_gen: v6e
topology: v6e:2x2x1
jax: 0.10.0
libtpu: 0.0.40
codegen_flags: <defaults>
</compile_context>

<pallas_src>
import functools
from math import pi as PI

import jax
import jax.numpy as jnp
from jax.experimental import pallas as pl
from jax.experimental.pallas import tpu as pltpu


def _round_up(x, m):
    return ((x + m - 1) // m) * m


def _int_pow(x, p):
    """x**p with a fixed multiply chain (binary exponentiation, trace time)."""
    result = None
    base = x
    e = int(p)
    while e > 0:
        if e & 1:
            result = base if result is None else result * base
        e >>= 1
        if e:
            base = base * base
    return result


def _bessel_kernel(dist_ref, freq_ref, out_ref, *, cutoff, p):
    # Envelope coefficients (exactly as in the PyTorch Envelope.__init__)
    a = -(p + 1) * (p + 2) / 2
    b = p * (p + 2)
    c = -p * (p + 1) / 2

    # dist block is (1, TN): N on lanes, broadcast over R is a cheap sublane
    # direction broadcast.
    x = dist_ref[...].astype(jnp.float32) * (1.0 / cutoff)        # (1, TN)

    # 1/x on the EUP (approx drops the Newton-refinement VPU multiplies).
    recip = pl.reciprocal(x, approx=True)

    # Horner-ized envelope: 1/x + x^p * (a + x*(b + c*x)); x^p via squarings.
    x_pow_p = _int_pow(x, p)                                      # 3 muls for p=6
    env_val = recip + x_pow_p * (a + x * (b + c * x))
    env = jnp.where(x < 1.0, env_val, 0.0)                        # (1, TN)

    # freq block is (R, 1): single lane-broadcast per grid step.
    freq = freq_ref[...].astype(jnp.float32)                      # (R, 1)
    out_ref[...] = (env * jnp.sin(freq * x)).astype(out_ref.dtype)  # (R, TN)


def bessel_basis_layer(dist, freq, cutoff, envelope_exponent=6,
                       tile_n=16384, out_dtype=jnp.float32):
    """dist: [N] float, freq: [num_radial] float -> [N, num_radial]."""
    N = dist.shape[0]
    R = freq.shape[0]
    lane = 128

    # Pick a lane-aligned tile; keep >= 2 grid steps when N allows (v7x has
    # two TensorCores and a single block would run on only one of them).
    n_min = _round_up(N, lane)
    tile = min(_round_up(int(tile_n), lane), n_min)
    if n_min > lane and _round_up(N, tile) // tile < 2:
        tile = _round_up((n_min + 1) // 2, lane)
    n_pad = _round_up(N, tile)
    grid = n_pad // tile

    # Pad with a distance beyond the cutoff so padded lanes get env == 0
    # (also avoids 1/0 on the padding).
    dist_p = jnp.pad(dist.astype(jnp.float32), (0, n_pad - N),
                     constant_values=2.0 * float(cutoff))
    dist2d = dist_p.reshape(1, n_pad)                  # N on lanes
    freq2d = freq.astype(jnp.float32).reshape(R, 1)

    kernel = functools.partial(
        _bessel_kernel, cutoff=float(cutoff), p=int(envelope_exponent)
    )

    out_t = pl.pallas_call(
        kernel,
        out_shape=jax.ShapeDtypeStruct((R, n_pad), out_dtype),
        grid_spec=pltpu.PrefetchScalarGridSpec(
            num_scalar_prefetch=0,
            grid=(grid,),
            in_specs=[
                pl.BlockSpec((1, tile), lambda i: (0, i)),   # dist: lane-tiled
                pl.BlockSpec((R, 1), lambda i: (0, 0)),      # freq: resident
            ],
            out_specs=pl.BlockSpec((R, tile), lambda i: (0, i)),
        ),
        compiler_params=pltpu.CompilerParams(
            dimension_semantics=("parallel",),
            vmem_limit_bytes=32 * 1024 * 1024,
        ),
    )(dist2d, freq2d)

    # Back to the PyTorch module's (N, num_radial) convention.
    return out_t[:, :N].T


def bessel_basis_ref(dist, freq, cutoff, envelope_exponent=6):
    """Pure-JAX reference mirroring the PyTorch forward."""
    p = envelope_exponent
    a = -(p + 1) * (p + 2) / 2
    b = p * (p + 2)
    c = -p * (p + 1) / 2
    x = dist[:, None] / cutoff
    x0 = x ** p
    x1 = x0 * x
    env = jnp.where(x < 1.0, 1.0 / x + a * x0 + b * x1 + c * x1 * x, 0.0)
    return env * jnp.sin(freq[None, :] * x)


if __name__ == "__main__":
    num_radial = 8
    cutoff = 5.0
    envelope_exponent = 6
    N = 128  # number of edges / distances (deliberately small demo)

    # Deterministic parameter init (as in reset_parameters): freq_k = k * pi
    freq = jnp.arange(1, num_radial + 1, dtype=jnp.float32) * PI

    key = jax.random.PRNGKey(0)
    # Distances in (0, 1.2*cutoff) so some fall outside the cutoff (envelope -> 0).
    # TODO(synk): dist == 0 gives +inf (matches the PyTorch reference); clamp upstream if needed.
    dist = jax.random.uniform(
        key, (N,), dtype=jnp.float32, minval=0.05, maxval=1.2 * cutoff
    )

    out = bessel_basis_layer(dist, freq, cutoff, envelope_exponent)
    out = jax.block_until_ready(out)

    ref = bessel_basis_ref(dist, freq, cutoff, envelope_exponent)
    assert out.shape == (N, num_radial)
    # Tolerance accounts for the EUP approximate reciprocal in the envelope.
    assert jnp.allclose(out, ref, atol=5e-3, rtol=5e-3), "mismatch vs reference"

    print("KERNEL_OK")
</pallas_src>

<mosaic_0001>
module attributes {stable_mosaic.version = 11 : i64} {
  func.func @_bessel_kernel(%arg0: i32, %arg1: memref<1x128xf32, #tpu.memory_space<vmem>>, %arg2: memref<8x1xf32, #tpu.memory_space<vmem>>, %arg3: memref<8x128xf32, #tpu.memory_space<vmem>>) attributes {dimension_semantics = [#tpu.dimension_semantics<parallel>], iteration_bounds = array<i64: 1>, scalar_prefetch = 0 : i64, scratch_operands = 0 : i64, tpu.core_type = #tpu.core_type<tc>, window_params = [{transform_indices = @transform_0, window_bounds = array<i64: 1, 128>}, {pipeline_mode = #tpu.pipeline_mode<synchronous>, transform_indices = @transform_1, window_bounds = array<i64: 8, 1>}, {transform_indices = @transform_2, window_bounds = array<i64: 8, 128>}]} {
    %c0 = arith.constant 0 : index
    %c0_0 = arith.constant 0 : index
    %0 = vector.load %arg1[%c0, %c0_0] : memref<1x128xf32, #tpu.memory_space<vmem>>, vector<1x128xf32>
    %cst = arith.constant 2.000000e-01 : f32
    %1 = vector.broadcast %cst : f32 to vector<1x128xf32>
    %2 = arith.mulf %0, %1 : vector<1x128xf32>
    %3 = tpu.reciprocal %2 {approx = true} : vector<1x128xf32> -> vector<1x128xf32>
    %4 = arith.mulf %2, %2 : vector<1x128xf32>
    %5 = arith.mulf %4, %4 : vector<1x128xf32>
    %6 = arith.mulf %4, %5 : vector<1x128xf32>
    %cst_1 = arith.constant -2.100000e+01 : f32
    %7 = vector.broadcast %cst_1 : f32 to vector<1x128xf32>
    %8 = arith.mulf %7, %2 : vector<1x128xf32>
    %cst_2 = arith.constant 4.800000e+01 : f32
    %9 = vector.broadcast %cst_2 : f32 to vector<1x128xf32>
    %10 = arith.addf %9, %8 : vector<1x128xf32>
    %11 = arith.mulf %2, %10 : vector<1x128xf32>
    %cst_3 = arith.constant -2.800000e+01 : f32
    %12 = vector.broadcast %cst_3 : f32 to vector<1x128xf32>
    %13 = arith.addf %12, %11 : vector<1x128xf32>
    %14 = arith.mulf %6, %13 : vector<1x128xf32>
    %15 = arith.addf %3, %14 : vector<1x128xf32>
    %cst_4 = arith.constant 1.000000e+00 : f32
    %16 = vector.broadcast %cst_4 : f32 to vector<1x128xf32>
    %17 = arith.cmpf olt, %2, %16 : vector<1x128xf32>
    %cst_5 = arith.constant 0.000000e+00 : f32
    %18 = vector.broadcast %cst_5 : f32 to vector<1x128xf32>
    %19 = arith.select %17, %15, %18 : vector<1x128xi1>, vector<1x128xf32>
    %c0_6 = arith.constant 0 : index
    %c0_7 = arith.constant 0 : index
    %20 = vector.load %arg2[%c0_6, %c0_7] : memref<8x1xf32, #tpu.memory_space<vmem>>, vector<8x1xf32>
    %21 = vector.broadcast %20 : vector<8x1xf32> to vector<8x128xf32>
    %22 = vector.broadcast %2 : vector<1x128xf32> to vector<8x128xf32>
    %23 = arith.mulf %21, %22 : vector<8x128xf32>
    %24 = math.sin %23 : vector<8x128xf32>
    %25 = vector.broadcast %19 : vector<1x128xf32> to vector<8x128xf32>
    %26 = arith.mulf %25, %24 : vector<8x128xf32>
    %c0_8 = arith.constant 0 : index
    %c0_9 = arith.constant 0 : index
    %27 = vector.load %arg3[%c0_8, %c0_9] : memref<8x128xf32, #tpu.memory_space<vmem>>, vector<8x128xf32>
    tpu.vector_store %arg3[%c0_8, %c0_9], %26 {strides = array<i32>} : memref<8x128xf32, #tpu.memory_space<vmem>>, vector<8x128xf32>,
    return
  }
  func.func @transform_0(%arg0: i32) -> (i32, i32) {
    %c0_i32 = arith.constant 0 : i32
    %c0_i32_0 = arith.constant 0 : i32
    return %c0_i32, %arg0 : i32, i32
  }
  func.func @transform_1(%arg0: i32) -> (i32, i32) {
    %c0_i32 = arith.constant 0 : i32
    %c0_i32_0 = arith.constant 0 : i32
    %c0_i32_1 = arith.constant 0 : i32
    return %c0_i32, %c0_i32_0 : i32, i32
  }
  func.func @transform_2(%arg0: i32) -> (i32, i32) {
    %c0_i32 = arith.constant 0 : i32
    %c0_i32_0 = arith.constant 0 : i32
    return %c0_i32, %arg0 : i32, i32
  }
}

</mosaic_0001>

<bundles_post_ra>
// kernel: tpu_custom_call.1
= control target key start
LH: loop header
LB: loop body
LE: loop exit
PB: predicated region body
PF: predicated region fallthrough
CT: control target
= control target key end

     0   :  { %v210_v1 = vmov 0   ;;  %s279_s0 = inlined_call_operand.vmem [shape: f32[1,128], index: 0, kind: input, shape index: {}]   ;;  %s280_s1 = inlined_call_operand.vmem [shape: f32[8,1], index: 1, kind: input, shape index: {}]   ;;  %s281_s2 = inlined_call_operand.hbm [shape: f32[8,128], index: 2, kind: output, shape index: {}]  }
   0x1   :  { %v26_v0 = vld [vmem:[%s280_s1] sm:$0xff]  ;;  %181 = vset.pattern.permute.xlu0 %v210_v1 }
   0x2   :  { %29 = vperm.xlu0 %181, %v26_v0  }
   0x3   :  { %7 = vsyncpa [#allocation3], 0  ;;  %v33_v2 = vlaneseq  ;;  %v12_v4 = vld [vmem:[%s279_s0] sm:$0x1]  ;;  %v211_v20 = vmov 683565275  }
   0x4   :  { %v242_v6 = vmul.f32 0.2, %v12_v4  ;;  %v212_v22 = vmov 2475754826   ;;  %v213_v25 = vmov 2131351028  }
   0x5   :  { %v236_v3 = vshrl.u32 %v33_v2, 7  ;;  %v214_v28 = vmov 2102212464   ;;  %v215_v31 = vmov 920167782   ;;  %s217_s0 = smov [#allocation2]  }
   0x6   :  { %v216_v34 = vmov 1326507024   ;;  %182 = vrcp.f32 %v242_v6  ;;  %vm24_vm9 = vcmp.lt.f32.partialorder %v242_v6, 1.0  ;;  %s157_s1 = sshll.u32 %s217_s0, 4  ;;  %s158_s1 = int_to_ptr.vmem [resolvable:$true] %s157_s1 }
   0x7   :  { %v35_v5 = vsub.s32 0, %v236_v3  ;;  %s188_s13 = scalar_lea.vmem %s158_s1, 128  ;;  %p193_p1 = scmp.lt.s32.totalorder %s158_s1, %s158_s1 }
   0x8   :  { %p189_p0 = scmp.ne.s32.totalorder %s158_s1, %s188_s13  ;;  %p194_p2 = scmp.lt.s32.totalorder %s188_s13, %s188_s13 }
   0x9   :  { %v36_v7 = vrot.slane %v242_v6, %v35_v5 }
   0xa   :  { %p195_p3 = por %p194_p2, %p193_p1 }
   0xc   :  { %p196_p4 = pnand %p195_p3, %p189_p0 }
  0x7d   :  { %v30_v8 = vpop.permute.xlu0 %29 }
  0x7e   :  { %v247_v9 = vmul.f32 %v36_v7, %v30_v8 }
  0x80   :  { %v42_v10 = vand.u32 2139095040, %v247_v9  ;;  %v39_v14 = vand.u32 2147483647, %v247_v9  ;;  %vm41_vm7 = vcmp.lt.s32.totalorder %v247_v9, 0  ;;  %vm131_vm13 = vweird.f32 %v247_v9 }
  0x82   :  { %v43_v11 = vshrl.u32 %v42_v10, 23  ;;  %v46_v17 = vand.u32 8388607, %v39_v14  ;;  %vm40_vm8 = vcmp.le.f32.partialorder %v39_v14, 0.7853982 }
  0x84   :  { %v165_v12 = vadd.s32 4294967169, %v43_v11  ;;  %v47_v36 = vor.u32 8388608, %v46_v17 }
  0x86   :  { %v49_v13 = vadd.s32 1, %v165_v12  ;;  %v87_v50 = vshll.u32 %v47_v36, 8 }
  0x88   :  { %vm50_vm0 = vcmp.gt.s32.totalorder %v49_v13, 0 }
  0x89   :  { %v51_v15 = vsel %vm50_vm0, %v49_v13, 0 }
  0x8a   :  { %v53_v16 = vand.u32 31, %v51_v15  ;;  %v52_v19 = vshrl.u32 %v51_v15, 5 }
  0x8c   :  { %v54_v18 = vsub.s32 32, %v53_v16  ;;  %v56_v21 = vshll.u32 %v211_v20, %v53_v16  ;;  %v59_v23 = vshll.u32 %v212_v22, %v53_v16  ;;  %v62_v27 = vshll.u32 %v213_v25, %v53_v16 }
  0x8d   :  { %v65_v30 = vshll.u32 %v214_v28, %v53_v16  ;;  %v68_v33 = vshll.u32 %v215_v31, %v53_v16  ;;  %vm71_vm1 = vcmp.lt.s32.totalorder %v52_v19, 1  ;;  %vm74_vm2 = vcmp.lt.s32.totalorder %v52_v19, 4 }
  0x8e   :  { %v57_v24 = vshrl.u32 %v212_v22, %v54_v18  ;;  %v60_v26 = vshrl.u32 %v213_v25, %v54_v18  ;;  %v63_v29 = vshrl.u32 %v214_v28, %v54_v18  ;;  %v66_v32 = vshrl.u32 %v215_v31, %v54_v18 }
  0x8f   :  { %v69_v35 = vshrl.u32 %v216_v34, %v54_v18  ;;  %v55_v45 = vshrl.u32 %v211_v20, %v54_v18  ;;  %vm73_vm3 = vcmp.lt.s32.totalorder %v52_v19, 3  ;;  %vm72_vm4 = vcmp.lt.s32.totalorder %v52_v19, 2 }
  0x90   :  { %v58_v37 = vor.u32 %v57_v24, %v56_v21  ;;  %v61_v38 = vor.u32 %v60_v26, %v59_v23  ;;  %v64_v39 = vor.u32 %v63_v29, %v62_v27  ;;  %v67_v40 = vor.u32 %v66_v32, %v65_v30 }
  0x91   :  { %v70_v41 = vor.u32 %v69_v35, %v68_v33  ;;  %v18_v22 = vmul.f32 -21.0, %v242_v6  ;;  %v15_v26 = vmul.f32 %v242_v6, %v242_v6 }
  0x92   :  { %v76_v42 = vsel %vm74_vm2, %v64_v39, 2102212464  ;;  %v79_v43 = vsel %vm71_vm1, %v58_v37, %v61_v38  ;;  %v83_v44 = vsel %vm71_vm1, %v61_v38, %v64_v39  ;;  %v80_v46 = vsel %vm74_vm2, %v67_v40, 920167782 }
  0x93   :  { %v84_v47 = vsel %vm74_vm2, %v70_v41, 1326507024  ;;  %v81_v48 = vsel %vm73_vm3, %v64_v39, %v80_v46  ;;  %v75_v51 = vsel %vm71_vm1, %v55_v45, %v58_v37  ;;  %v77_v52 = vsel %vm73_vm3, %v61_v38, %v76_v42 }
  0x94   :  { %v85_v49 = vsel %vm73_vm3, %v67_v40, %v84_v47  ;;  %v82_v53 = vsel %vm72_vm4, %v79_v43, %v81_v48  ;;  %v78_v59 = vsel %vm72_vm4, %v75_v51, %v77_v52  ;;  %v19_v27 = vadd.f32 48.0, %v18_v22  ;;  %v183_v40 = vpop.eup %182 }
  0x95   :  { %v86_v54 = vsel %vm72_vm4, %v83_v44, %v85_v49  ;;  %v256_v57 = vmul.u32.u64.low %v87_v50, %v82_v53  ;;  %v257_v58 = vmul.u32.u64.high %v87_v50, %v82_v53, %v256_v57  ;;  %v94_v61 = vmul.u32 %v87_v50, %v78_v59 }
  0x96   :  { %v253_v55 = vmul.u32.u64.low %v87_v50, %v86_v54  ;;  %v254_v56 = vmul.u32.u64.high %v87_v50, %v86_v54, %v253_v55  ;;  %v16_v30 = vmul.f32 %v15_v26, %v15_v26  ;;  %v20_v31 = vmul.f32 %v19_v27, %v242_v6 }
  0x97   :  { %v97_v60 = vadd.s32 1, %v257_v58 }
  0x98   :  { %vm96_vm5 = vc.u32 %v254_v56, %v256_v57  ;;  %v95_v13 = vadd.s32 %v256_v57, %v254_v56  ;;  %v17_v35 = vmul.f32 %v16_v30, %v15_v26  ;;  %v21_v36 = vadd.f32 -28.0, %v20_v31 }
  0x99   :  { %v98_v62 = vsel %vm96_vm5, %v97_v60, %v257_v58 }
  0x9a   :  { %v99_v63 = vadd.s32 %v98_v62, %v94_v61  ;;  %v22_v39 = vmul.f32 %v21_v36, %v17_v35 }
  0x9c   :  { %v100_v0 = vadd.s32 536870912, %v99_v63  ;;  %v23_v42 = vadd.f32 %v183_v40, %v22_v39 }
  0x9e   :  { %v101_v1 = vshrl.u32 %v100_v0, 30  ;;  %v25_v45 = vsel %vm24_vm9, %v23_v42, 0.0 }
  0x9f   :  { %v147_v49 = vrot.slane %v25_v45, %v35_v5 }
  0xa0   :  { %v102_v2 = vshll.u32 %v101_v1, 30  ;;  %v125_v32 = vsub.s32 4, %v101_v1 }
  0xa2   :  { %v103_v4 = vsub.s32 %v99_v63, %v102_v2  ;;  %v126_v37 = vsel %vm41_vm7, %v125_v32, %v101_v1 }
  0xa3   :  { %v128_v38 = vsel %vm40_vm8, 0, %v126_v37 }
  0xa4   :  { %v105_v7 = vsub.s32 0, %v103_v4  ;;  %v132_v41 = vadd.s32 3, %v128_v38 }
  0xa6   :  { %v166_v8 = vmin.u32 %v105_v7, %v103_v4  ;;  %v133_v43 = vand.u32 3, %v132_v41 }
  0xa8   :  { %v107_v10 = vclz %v166_v8  ;;  %vm138_vm10 = vcmp.eq.s32.totalorder %v133_v43, 2  ;;  %vm135_vm11 = vcmp.eq.s32.totalorder %v133_v43, 0  ;;  %vm134_vm12 = vcmp.lt.s32.totalorder %v133_v43, 2 }
  0xaa   :  { %v167_v11 = vadd.s32 4294967294, %v107_v10 }
  0xac   :  { %vm168_vm6 = vcmp.lt.s32.totalorder %v167_v11, 0 }
  0xad   :  { %v110_v12 = vsel %vm168_vm6, 0, %v167_v11 }
  0xae   :  { %v111_v15 = vsub.s32 32, %v110_v12  ;;  %v115_v16 = vsub.s32 4294967266, %v110_v12  ;;  %v112_v17 = vshll.u32 %v103_v4, %v110_v12 }
  0xb0   :  { %v113_v18 = vshrl.u32 %v95_v13, %v111_v15  ;;  %v116_v19 = vadd.s32 127, %v115_v16 }
  0xb2   :  { %v114_v20 = vor.u32 %v113_v18, %v112_v17  ;;  %v117_v21 = vshll.u32 %v116_v19, 23 }
  0xb4   :  { %v118_v23 = vor.u32 4788187, %v117_v21  ;;  %v121_v25 = vcvt.s32.f32 %v114_v20 }
  0xb6   :  { %v119_v24 = vand.u32 2147483647, %v118_v23 }
  0xb8   :  { %v122_v28 = vmul.f32 %v121_v25, %v119_v24 }
  0xba   :  { %v123_v29 = vxor.u32 2147483648, %v122_v28 }
  0xbc   :  { %v124_v33 = vsel %vm41_vm7, %v123_v29, %v122_v28 }
  0xbd   :  { %v127_v34 = vsel %vm40_vm8, %v247_v9, %v124_v33 }
  0xbe   :  { %184 = vcosq.f32 %v127_v34 }
  0xbf   :  { %186 = vsinq.f32 %v127_v34 }
  0xcb   :  { %v185_v44 = vpop.eup %184 }
  0xcc   :  { %v187_v46 = vpop.eup %186  ;;  %v139_v47 = vxor.u32 2147483648, %v185_v44 }
  0xcd   :  { %v136_v14 = vxor.u32 2147483648, %v187_v46 }
  0xce   :  { %v140_v48 = vsel %vm138_vm10, %v139_v47, %v187_v46 }
  0xcf   :  { %v137_v50 = vsel %vm135_vm11, %v185_v44, %v136_v14 }
  0xd0   :  { %v141_v51 = vsel %vm134_vm12, %v137_v50, %v140_v48 }
  0xd1   :  { %v142_v6 = vsel %vm131_vm13, nan, %v141_v51 }
  0xd2   :  { %v149_v52 = vmul.f32 %v147_v49, %v142_v6 }
  0xd4   :  { %150 = vst [vmem:[#allocation2] sm:$0xff] %v149_v52 }
  0xd5   :  { %199 = shalt.err (!%p196_p4)
}
  0xd6   :  { %160 = dma.vmem_to_hbm [thread:$0]  %s158_s1, 128, %s281_s2, [#allocation3]  }
  0xd7   :  { %208 = dma.done.wait [#allocation3], 128  }
  0xd8   :  { %209 = vsyncadd [#allocation3], 4294967168 }
  0xd9   :  { %164 = vsyncpa [#allocation3], 1 }

</bundles_post_ra>
